<compile_context>
chip_gen: v7x
topology: tpu7x:2x2x1
jax: 0.10.0
libtpu: 0.0.40
codegen_flags: <defaults>
</compile_context>

<pallas_src>
import numpy as np

import jax
import jax.numpy as jnp
from jax import lax
from jax.experimental import pallas as pl
from jax.experimental.pallas import tpu as pltpu


def _round_up(x, m):
    return ((x + m - 1) // m) * m


def _make_kernel(quantiles, low_penalty, T, L, p50_idx, shared_pred, compute_trend):
    nq = len(quantiles)
    g = L // T  # number of original batch rows folded into one lane row

    def kernel(preds_ref, target_ref, out_ref):
        # preds_ref : VMEM (QP, tb, L)   QP = Q (multi-quantile) or 1 (shared)
        # target_ref: VMEM (tb, L)
        # out_ref   : SMEM (1, nq + 1)   per-block partial sums
        target = target_ref[...].astype(jnp.float32)

        p50 = None
        for i, q in enumerate(quantiles):
            pred = preds_ref[0 if shared_pred else i].astype(jnp.float32)
            if compute_trend and i == p50_idx:
                p50 = pred  # reuse already-loaded slab for the trend term
            err = target - pred
            # where(err>0, err*q*lp, |err|*(1-q)) == max(err*q*lp, err*(q-1))
            # for q in (0,1), lp > 0  (fuses cmp/select/abs into one max).
            weighted = jnp.maximum(err * (q * low_penalty), err * (q - 1.0))
            out_ref[0, i] = jnp.sum(weighted)

        if compute_trend:
            if p50 is None:
                p50 = preds_ref[p50_idx].astype(jnp.float32)
            # |Δp50 - Δtarget| == |Δ(p50 - target)|  -> one diff instead of two
            r = p50 - target
            dr = r[:, 1:] - r[:, :-1]                       # (tb, L - 1)
            adiff = jnp.abs(dr)
            # Mask the columns where the diff would straddle two folded rows.
            col = lax.broadcasted_iota(jnp.int32, adiff.shape, 1)
            seg_end = col == (T - 1)
            for s in range(1, g):                           # static unroll
                seg_end = seg_end | (col == (s * T + T - 1))
            out_ref[0, nq] = jnp.sum(jnp.where(seg_end, 0.0, adiff))
        else:
            out_ref[0, nq] = jnp.float32(0.0)

    return kernel


def scale_aware_quantile_loss(preds, target, quantiles, low_penalty=20.0,
                              row_block=512):
    """preds: (B, T, Q) or (B, T); target: (B, T).
    Returns (total_loss, [per-quantile mean losses])."""
    quantiles = tuple(float(q) for q in quantiles)
    nq = len(quantiles)
    B, T = int(target.shape[0]), int(target.shape[1])

    multi_q = preds.ndim > target.ndim
    QP = int(preds.shape[-1]) if multi_q else 1
    # Exact PyTorch trend-path condition (static on shapes).
    compute_trend = multi_q and preds.ndim > 2 and target.ndim > 1 and T > 1
    # The PyTorch module hard-codes column 1 as "p50" when >= 2 columns exist.
    p50_idx = 1 if QP >= 2 else 0

    # ---- lane-dense folding: pack g batch rows onto the 128-wide lane axis --
    LANE = 128
    if T < LANE:
        g = max(1, min(LANE // T, -(-B // 8)))   # don't over-pad tiny batches
    else:
        g = 1
    L = g * T
    rows = -(-B // g)                             # ceil(B / g)
    tb = min(_round_up(row_block, 8), _round_up(rows, 8))
    rows_pad = _round_up(rows, tb)
    Bp = rows_pad * g
    nb = rows_pad // tb

    def fold2d(x):                                # (B, T) -> (rows_pad, L)
        x = jnp.pad(x, ((0, Bp - B), (0, 0)))
        return x.reshape(rows_pad, L)

    target_k = fold2d(target)
    if multi_q:
        pk = jnp.moveaxis(preds, -1, 0)           # (Q, B, T) contiguous slabs
        pk = jnp.pad(pk, ((0, 0), (0, Bp - B), (0, 0)))
        preds_k = pk.reshape(QP, rows_pad, L)
    else:
        preds_k = fold2d(preds)[None]             # (1, rows_pad, L); no broadcast

    kernel = _make_kernel(quantiles, float(low_penalty), T, L, p50_idx,
                          shared_pred=not multi_q, compute_trend=compute_trend)

    partials = pl.pallas_call(
        kernel,
        out_shape=jax.ShapeDtypeStruct((nb, nq + 1), jnp.float32),
        grid=(nb,),
        in_specs=[
            pl.BlockSpec((preds_k.shape[0], tb, L), lambda i: (0, i, 0)),
            pl.BlockSpec((tb, L), lambda i: (i, 0)),
        ],
        out_specs=pl.BlockSpec((1, nq + 1), lambda i: (i, 0),
                               memory_space=pltpu.SMEM),
        compiler_params=pltpu.CompilerParams(
            dimension_semantics=("parallel",),
            vmem_limit_bytes=32 * 1024 * 1024,
        ),
    )(preds_k, target_k)

    sums = jnp.sum(partials, axis=0)              # (nq + 1,)
    losses = sums[:nq] / float(B * T)
    total = jnp.mean(losses)
    if compute_trend:
        total = total + sums[nq] * (0.5 / float(B * (T - 1)))
    return total, [losses[i] for i in range(nq)]


def _reference(preds, target, quantiles, low_penalty=20.0):
    preds = np.asarray(preds, np.float64)
    target = np.asarray(target, np.float64)
    losses = []
    for i, q in enumerate(quantiles):
        cur = preds[..., i] if preds.ndim > target.ndim else preds
        err = target - cur
        w = np.where(err > 0, err * q * low_penalty, np.abs(err) * (1 - q))
        losses.append(w.mean())
    total = float(np.mean(losses))
    if preds.ndim > 2 and target.ndim > 1 and preds.shape[1] > 1 and target.shape[1] > 1:
        p50 = preds[..., 1] if preds.shape[-1] >= 2 else preds[..., 0]
        pd = p50[:, 1:] - p50[:, :-1]
        td = target[:, 1:] - target[:, :-1]
        total = total + float(np.mean(np.abs(pd - td))) * 0.5
    return total, losses


if __name__ == "__main__":
    quantiles = (0.1, 0.5, 0.9)
    low_penalty = 20.0
    key = jax.random.PRNGKey(0)
    k1, k2, k3, k4 = jax.random.split(key, 4)

    # --- 1) small shapes from the module: B=2, T=8, Q=3 (with trend term) ----
    B, T, Q = 2, 8, len(quantiles)
    preds = jax.random.normal(k1, (B, T, Q), dtype=jnp.float32)
    target = jax.random.normal(k2, (B, T), dtype=jnp.float32)
    total, per_q = scale_aware_quantile_loss(preds, target, quantiles, low_penalty)
    total = jax.block_until_ready(total)
    ref_total, ref_losses = _reference(preds, target, quantiles, low_penalty)
    assert np.allclose(np.asarray(total), ref_total, rtol=1e-4, atol=1e-5)
    for got, want in zip(per_q, ref_losses):
        assert np.allclose(np.asarray(got), want, rtol=1e-4, atol=1e-5)

    # --- 2) multi-block grid + batch padding (B not divisible by tile) -------
    B2, T2 = 250, 8
    p2 = jax.random.normal(k3, (B2, T2, Q), dtype=jnp.float32)
    t2 = jax.random.normal(k4, (B2, T2), dtype=jnp.float32)
    total2, per_q2 = scale_aware_quantile_loss(p2, t2, quantiles, low_penalty,
                                               row_block=8)
    total2 = jax.block_until_ready(total2)
    rt2, rl2 = _reference(p2, t2, quantiles, low_penalty)
    assert np.allclose(np.asarray(total2), rt2, rtol=1e-4, atol=1e-5)
    for got, want in zip(per_q2, rl2):
        assert np.allclose(np.asarray(got), want, rtol=1e-4, atol=1e-5)

    # --- 3) shared single prediction path (preds.ndim == target.ndim) --------
    p3 = jax.random.normal(k3, (B, T), dtype=jnp.float32)
    t3 = jax.random.normal(k4, (B, T), dtype=jnp.float32)
    total3, _ = scale_aware_quantile_loss(p3, t3, quantiles, low_penalty)
    total3 = jax.block_until_ready(total3)
    rt3, _ = _reference(p3, t3, quantiles, low_penalty)
    assert np.allclose(np.asarray(total3), rt3, rtol=1e-4, atol=1e-5)

    print("KERNEL_OK")
</pallas_src>

<mosaic_0001>
module attributes {stable_mosaic.version = 11 : i64} {
  func.func @kernel(%arg0: i32, %arg1: memref<3x8x8xf32, #tpu.memory_space<vmem>>, %arg2: memref<8x8xf32, #tpu.memory_space<vmem>>, %arg3: memref<1x4xf32, #tpu.memory_space<smem>>) attributes {dimension_semantics = [#tpu.dimension_semantics<parallel>], iteration_bounds = array<i64: 1>, scalar_prefetch = 0 : i64, scratch_operands = 0 : i64, tpu.core_type = #tpu.core_type<tc>, window_params = [{transform_indices = @transform_0, window_bounds = array<i64: 3, 8, 8>}, {transform_indices = @transform_1, window_bounds = array<i64: 8, 8>}, {transform_indices = @transform_2, window_bounds = array<i64: 1, 4>}]} {
    %c0 = arith.constant 0 : index
    %c0_0 = arith.constant 0 : index
    %0 = vector.load %arg2[%c0, %c0_0] : memref<8x8xf32, #tpu.memory_space<vmem>>, vector<8x8xf32>
    %c0_1 = arith.constant 0 : index
    %c0_2 = arith.constant 0 : index
    %c0_3 = arith.constant 0 : index
    %1 = vector.load %arg1[%c0_1, %c0_2, %c0_3] : memref<3x8x8xf32, #tpu.memory_space<vmem>>, vector<1x8x8xf32>
    %2 = vector.shape_cast %1 : vector<1x8x8xf32> to vector<8x8xf32>
    %3 = arith.subf %0, %2 : vector<8x8xf32>
    %cst = arith.constant 2.000000e+00 : f32
    %4 = vector.broadcast %cst : f32 to vector<8x8xf32>
    %5 = arith.mulf %3, %4 : vector<8x8xf32>
    %cst_4 = arith.constant -0.899999976 : f32
    %6 = vector.broadcast %cst_4 : f32 to vector<8x8xf32>
    %7 = arith.mulf %3, %6 : vector<8x8xf32>
    %8 = arith.maximumf %5, %7 : vector<8x8xf32>
    %9 = vector.shape_cast %8 : vector<8x8xf32> to vector<1x8x8xf32>
    %cst_5 = arith.constant dense<0.000000e+00> : vector<1xf32>
    %10 = vector.multi_reduction <add>, %9, %cst_5 [1, 2] : vector<1x8x8xf32> to vector<1xf32>
    %11 = vector.shape_cast %10 : vector<1xf32> to vector<1x1x1xf32>
    %12 = vector.extract %11[0, 0, 0] : f32 from vector<1x1x1xf32>
    %c0_6 = arith.constant 0 : index
    %c0_7 = arith.constant 0 : index
    %13 = memref.load %arg3[%c0_6, %c0_7] : memref<1x4xf32, #tpu.memory_space<smem>>
    memref.store %12, %arg3[%c0_6, %c0_7] : memref<1x4xf32, #tpu.memory_space<smem>>
    %c1 = arith.constant 1 : index
    %c0_8 = arith.constant 0 : index
    %c0_9 = arith.constant 0 : index
    %14 = vector.load %arg1[%c1, %c0_8, %c0_9] : memref<3x8x8xf32, #tpu.memory_space<vmem>>, vector<1x8x8xf32>
    %15 = vector.shape_cast %14 : vector<1x8x8xf32> to vector<8x8xf32>
    %16 = arith.subf %0, %15 : vector<8x8xf32>
    %cst_10 = arith.constant 1.000000e+01 : f32
    %17 = vector.broadcast %cst_10 : f32 to vector<8x8xf32>
    %18 = arith.mulf %16, %17 : vector<8x8xf32>
    %cst_11 = arith.constant -5.000000e-01 : f32
    %19 = vector.broadcast %cst_11 : f32 to vector<8x8xf32>
    %20 = arith.mulf %16, %19 : vector<8x8xf32>
    %21 = arith.maximumf %18, %20 : vector<8x8xf32>
    %22 = vector.shape_cast %21 : vector<8x8xf32> to vector<1x8x8xf32>
    %cst_12 = arith.constant dense<0.000000e+00> : vector<1xf32>
    %23 = vector.multi_reduction <add>, %22, %cst_12 [1, 2] : vector<1x8x8xf32> to vector<1xf32>
    %24 = vector.shape_cast %23 : vector<1xf32> to vector<1x1x1xf32>
    %25 = vector.extract %24[0, 0, 0] : f32 from vector<1x1x1xf32>
    %c0_13 = arith.constant 0 : index
    %c1_14 = arith.constant 1 : index
    %26 = memref.load %arg3[%c0_13, %c1_14] : memref<1x4xf32, #tpu.memory_space<smem>>
    memref.store %25, %arg3[%c0_13, %c1_14] : memref<1x4xf32, #tpu.memory_space<smem>>
    %c2 = arith.constant 2 : index
    %c0_15 = arith.constant 0 : index
    %c0_16 = arith.constant 0 : index
    %27 = vector.load %arg1[%c2, %c0_15, %c0_16] : memref<3x8x8xf32, #tpu.memory_space<vmem>>, vector<1x8x8xf32>
    %28 = vector.shape_cast %27 : vector<1x8x8xf32> to vector<8x8xf32>
    %29 = arith.subf %0, %28 : vector<8x8xf32>
    %cst_17 = arith.constant 1.800000e+01 : f32
    %30 = vector.broadcast %cst_17 : f32 to vector<8x8xf32>
    %31 = arith.mulf %29, %30 : vector<8x8xf32>
    %cst_18 = arith.constant -1.000000e-01 : f32
    %32 = vector.broadcast %cst_18 : f32 to vector<8x8xf32>
    %33 = arith.mulf %29, %32 : vector<8x8xf32>
    %34 = arith.maximumf %31, %33 : vector<8x8xf32>
    %35 = vector.shape_cast %34 : vector<8x8xf32> to vector<1x8x8xf32>
    %cst_19 = arith.constant dense<0.000000e+00> : vector<1xf32>
    %36 = vector.multi_reduction <add>, %35, %cst_19 [1, 2] : vector<1x8x8xf32> to vector<1xf32>
    %37 = vector.shape_cast %36 : vector<1xf32> to vector<1x1x1xf32>
    %38 = vector.extract %37[0, 0, 0] : f32 from vector<1x1x1xf32>
    %c0_20 = arith.constant 0 : index
    %c2_21 = arith.constant 2 : index
    %39 = memref.load %arg3[%c0_20, %c2_21] : memref<1x4xf32, #tpu.memory_space<smem>>
    memref.store %38, %arg3[%c0_20, %c2_21] : memref<1x4xf32, #tpu.memory_space<smem>>
    %40 = arith.subf %15, %0 : vector<8x8xf32>
    %41 = vector.extract_strided_slice %40 {offsets = [0, 1], sizes = [8, 7], strides = [1, 1]} : vector<8x8xf32> to vector<8x7xf32>
    %42 = vector.extract_strided_slice %40 {offsets = [0, 0], sizes = [8, 7], strides = [1, 1]} : vector<8x8xf32> to vector<8x7xf32>
    %43 = arith.subf %41, %42 : vector<8x7xf32>
    %44 = math.absf %43 : vector<8x7xf32>
    %45 = tpu.iota {dimensions = array<i32: 1>} : vector<8x7xi32>
    %c7_i32 = arith.constant 7 : i32
    %46 = vector.broadcast %c7_i32 : i32 to vector<8x7xi32>
    %47 = arith.cmpi eq, %45, %46 : vector<8x7xi32>
    %cst_22 = arith.constant 0.000000e+00 : f32
    %48 = vector.broadcast %cst_22 : f32 to vector<8x7xf32>
    %49 = arith.select %47, %48, %44 : vector<8x7xi1>, vector<8x7xf32>
    %50 = vector.shape_cast %49 : vector<8x7xf32> to vector<1x8x7xf32>
    %cst_23 = arith.constant dense<0.000000e+00> : vector<1xf32>
    %51 = vector.multi_reduction <add>, %50, %cst_23 [1, 2] : vector<1x8x7xf32> to vector<1xf32>
    %52 = vector.shape_cast %51 : vector<1xf32> to vector<1x1x1xf32>
    %53 = vector.extract %52[0, 0, 0] : f32 from vector<1x1x1xf32>
    %c0_24 = arith.constant 0 : index
    %c3 = arith.constant 3 : index
    %54 = memref.load %arg3[%c0_24, %c3] : memref<1x4xf32, #tpu.memory_space<smem>>
    memref.store %53, %arg3[%c0_24, %c3] : memref<1x4xf32, #tpu.memory_space<smem>>
    return
  }
  func.func @transform_0(%arg0: i32) -> (i32, i32, i32) {
    %c0_i32 = arith.constant 0 : i32
    %c0_i32_0 = arith.constant 0 : i32
    %c0_i32_1 = arith.constant 0 : i32
    return %c0_i32, %arg0, %c0_i32_0 : i32, i32, i32
  }
  func.func @transform_1(%arg0: i32) -> (i32, i32) {
    %c0_i32 = arith.constant 0 : i32
    %c0_i32_0 = arith.constant 0 : i32
    return %arg0, %c0_i32 : i32, i32
  }
  func.func @transform_2(%arg0: i32) -> (i32, i32) {
    %c0_i32 = arith.constant 0 : i32
    %c0_i32_0 = arith.constant 0 : i32
    return %arg0, %c0_i32 : i32, i32
  }
}

</mosaic_0001>

<bundles_post_ra>
// kernel: tpu_custom_call.1
= control target key start
LH: loop header
LB: loop body
LE: loop exit
PB: predicated region body
PF: predicated region fallthrough
CT: control target
= control target key end

     0   :  { %7 = vsyncpa [#allocation3], 0  ;;  %s269_s0 = inlined_call_operand.hbm [shape: f32[3,8,8], index: 0, kind: input, shape index: {}]   ;;  %s270_s1 = inlined_call_operand.hbm [shape: f32[8,8], index: 1, kind: input, shape index: {}]   ;;  %s271_s2 = inlined_call_operand.hbm [shape: f32[1,4], index: 2, kind: output, shape index: {}]  }
   0x1   :  { %8 = vsyncpa [#allocation6], 0 }
   0x2   :  { %9 = vsyncpa [#allocation4], 0  ;;  %s211_s9 = smov [#allocation2]   ;;  %s151_s13 = scalar_lea.hbm %s269_s0, 384 }
   0x3   :  { %s15_s10 = sshll.u32 %s211_s9, 4  ;;  %p152_p0 = scmp.ne.s32.totalorder %s269_s0, %s151_s13  ;;  %s16_s10 = int_to_ptr.vmem [resolvable:$true] %s15_s10 }
   0x4   :  { %p155_p1 = scmp.lt.u32.totalorder %s151_s13, %s269_s0 }
   0x6   :  { %p157_p2 = pnand %p155_p1, %p152_p0 }
   0x8   :  { %160 = shalt.err (!%p157_p2)
}
   0x9   :  { %s161_s18 = scalar_lea.vmem %s16_s10, 384  ;;  %p166_p4 = scmp.lt.s32.totalorder %s16_s10, %s16_s10 }
   0xa   :  { %p162_p3 = scmp.ne.s32.totalorder %s16_s10, %s161_s18  ;;  %p167_p5 = scmp.lt.s32.totalorder %s161_s18, %s161_s18 }
   0xc   :  { %p168_p6 = por %p167_p5, %p166_p4 }
   0xe   :  { %p169_p7 = pnand %p168_p6, %p162_p3 }
  0x10   :  { %172 = shalt.err (!%p169_p7)
}
  0x11   :  { %s212_s19 = smov 128   ;;  %s213_s20 = smov 8  }
  0x12   :  { %21 = dma.hbm_to_vmem [thread:$0]  %s269_s0, 384, %s16_s10, [#allocation3], %s212_s19, %s212_s19, %s213_s20  }
  0x13   :  { %s214_s23 = smov [#allocation5]   ;;  %s173_s27 = scalar_lea.hbm %s270_s1, 128 }
  0x14   :  { %s28_s24 = sshll.u32 %s214_s23, 4  ;;  %p174_p8 = scmp.ne.s32.totalorder %s270_s1, %s173_s27  ;;  %s29_s24 = int_to_ptr.vmem [resolvable:$true] %s28_s24 }
  0x15   :  { %p177_p9 = scmp.lt.u32.totalorder %s173_s27, %s270_s1 }
  0x17   :  { %p179_p10 = pnand %p177_p9, %p174_p8 }
  0x19   :  { %182 = shalt.err (!%p179_p10)
}
  0x1a   :  { %s183_s4 = scalar_lea.vmem %s29_s24, 128  ;;  %p188_p12 = scmp.lt.s32.totalorder %s29_s24, %s29_s24 }
  0x1b   :  { %p184_p11 = scmp.ne.s32.totalorder %s29_s24, %s183_s4  ;;  %p189_p13 = scmp.lt.s32.totalorder %s183_s4, %s183_s4 }
  0x1d   :  { %p190_p0 = por %p189_p13, %p188_p12 }
  0x1f   :  { %p191_p1 = pnand %p190_p0, %p184_p11 }
  0x21   :  { %194 = shalt.err (!%p191_p1)
}
  0x22   :  { %31 = dma.hbm_to_vmem [thread:$0]  %s270_s1, 128, %s29_s24, [#allocation6]  }
  0x23   :  { %205 = dma.done.wait [#allocation3], 384  }
  0x24   :  { %206 = vsyncadd [#allocation3], 4294966912 }
  0x25   :  { %207 = dma.done.wait [#allocation6], 128  }
  0x26   :  { %208 = vsyncadd [#allocation6], 4294967168  ;;  %v38_v0 = vld [vmem:[#allocation5] sm:$0xff]  ;;  %v58_v1 = vld [vmem:[#allocation2 + $0x8] sm:$0xff]  ;;  %s215_s6 = smov 1   ;;  %vm44_vm0 = vcmask 64512   ;;  %v100_v30 = vlaneseq }
  0x27   :  { %v39_v2 = vld [vmem:[#allocation2] sm:$0xff]  ;;  %v93_v3 = vsub.f32 %v58_v1, %v38_v0  ;;  %v59_v4 = vsub.f32 %v38_v0, %v58_v1  ;;  %v76_v6 = vld [vmem:[#allocation2 + $0x10] sm:$0xff]  ;;  %s216_s1 = smov 127   ;;  %vm108_vm2 = vcmask 56320   ;;  %s195_s13 = scalar_lea.hbm %s271_s2, 16 }
  0x28   :  { %v40_v5 = vsub.f32 %v38_v0, %v39_v2  ;;  %v77_v7 = vsub.f32 %v38_v0, %v76_v6  ;;  %v101_v31 = vand.u32 127, %v100_v30  ;;  %p196_p2 = scmp.ne.s32.totalorder %s271_s2, %s195_s13  ;;  %p199_p3 = scmp.lt.u32.totalorder %s195_s13, %s271_s2 }
  0x29   :  { %95 = vrot.lane.b32.xlu0 %v93_v3, %s215_s6  ;;  %v60_v10 = vmul.f32 10.0, %v59_v4  ;;  %v61_v11 = vmul.f32 -0.5, %v59_v4 }
  0x2a   :  { %v41_v8 = vmul.f32 2.0, %v40_v5  ;;  %v42_v9 = vmul.f32 -0.9, %v40_v5  ;;  %v78_v12 = vmul.f32 18.0, %v77_v7  ;;  %v79_v13 = vmul.f32 -0.1, %v77_v7  ;;  %p201_p4 = pnand %p199_p3, %p196_p2 }
  0x2b   :  { %v62_v15 = vmax.f32 %v60_v10, %v61_v11  ;;  %vm102_vm1 = vcmp.eq.s32.totalorder %v101_v31, 7 }
  0x2c   :  { %v43_v14 = vmax.f32 %v41_v8, %v42_v9  ;;  %v80_v16 = vmax.f32 %v78_v12, %v79_v13 }
  0x2d   :  { %v63_v19 = vsel %vm44_vm0, %v62_v15, 0.0 }
  0x2e   :  { %v45_v17 = vsel %vm44_vm0, %v43_v14, 0.0  ;;  %v81_v18 = vsel %vm44_vm0, %v80_v16, 0.0 }
  0x2f   :  { %46 = vadd.xlane.f32.xlu1 %v45_v17 }
  0x33   :  { %64 = vadd.xlane.f32.xlu1 %v63_v19 }
  0x9b   :  { %v96_v20 = vpop.permute.xlu0 %95 }
  0x9c   :  { %v98_v21 = vsub.f32 %v93_v3, %v96_v20 }
  0x9e   :  { %v99_v22 = vand.u32 2147483647, %v98_v21 }
  0xa0   :  { %104 = vrot.lane.b32.xlu0 %v99_v22, %s216_s1 }
  0xbc   :  { %v47_v23 = vpop.xlane.xlu1 %46 }
  0xbd   :  { %v48_v24 = vrot.slane %v47_v23, 4 }
  0xbf   :  { %82 = vadd.xlane.f32.xlu0 %v81_v18  ;;  %v49_v25 = vadd.f32 %v48_v24, %v47_v23 }
  0xc0   :  { %v65_v32 = vpop.xlane.xlu1 %64 }
  0xc1   :  { %v50_v26 = vrot.slane %v49_v25, 2  ;;  %v66_v35 = vrot.slane %v65_v32, 4 }
  0xc3   :  { %v51_v27 = vadd.f32 %v50_v26, %v49_v25  ;;  %v67_v37 = vadd.f32 %v66_v35, %v65_v32 }
  0xc5   :  { %v52_v28 = vrot.slane %v51_v27, 1  ;;  %v68_v38 = vrot.slane %v67_v37, 2 }
  0xc7   :  { %v53_v29 = vadd.f32 %v52_v28, %v51_v27  ;;  %v69_v39 = vadd.f32 %v68_v38, %v67_v37 }
  0xc9   :  { %136 = vpush %v53_v29  ;;  %v70_v40 = vrot.slane %v69_v39, 1 }
  0xcb   :  { %v71_v41 = vadd.f32 %v70_v40, %v69_v39 }
  0xcd   :  { %138 = vpush %v71_v41 }
  0xfa   :  { %s137_s7 = spop %136 }
  0xfb   :  { %56 = sst [smem:[#allocation7]] %s137_s7 }
  0xfe   :  { %s139_s8 = spop %138 }
  0xff   :  { %74 = sst [smem:[#allocation7 + $0x1]] %s139_s8 }
 0x112   :  { %v105_v33 = vpop.permute.xlu0 %104 }
 0x113   :  { %v107_v34 = vsel %vm102_vm1, 0.0, %v105_v33 }
 0x114   :  { %v109_v36 = vsel %vm108_vm2, %v107_v34, 0.0 }
 0x115   :  { %110 = vadd.xlane.f32.xlu1 %v109_v36 }
 0x14c   :  { %v83_v42 = vpop.xlane.xlu0 %82 }
 0x14d   :  { %v84_v43 = vrot.slane %v83_v42, 4 }
 0x14f   :  { %v85_v44 = vadd.f32 %v84_v43, %v83_v42 }
 0x151   :  { %v86_v45 = vrot.slane %v85_v44, 2 }
 0x153   :  { %v87_v46 = vadd.f32 %v86_v45, %v85_v44 }
 0x155   :  { %v88_v47 = vrot.slane %v87_v46, 1 }
 0x157   :  { %v89_v48 = vadd.f32 %v88_v47, %v87_v46 }
 0x159   :  { %140 = vpush %v89_v48 }
 0x18a   :  { %s141_s9 = spop %140 }
 0x18b   :  { %92 = sst [smem:[#allocation7 + $0x2]] %s141_s9 }
 0x1a2   :  { %v111_v49 = vpop.xlane.xlu1 %110 }
 0x1a3   :  { %v112_v50 = vrot.slane %v111_v49, 4 }
 0x1a5   :  { %v113_v51 = vadd.f32 %v112_v50, %v111_v49 }
 0x1a7   :  { %v114_v52 = vrot.slane %v113_v51, 2 }
 0x1a9   :  { %v115_v53 = vadd.f32 %v114_v52, %v113_v51 }
 0x1ab   :  { %v116_v54 = vrot.slane %v115_v53, 1 }
 0x1ad   :  { %v117_v55 = vadd.f32 %v116_v54, %v115_v53 }
 0x1af   :  { %142 = vpush %v117_v55 }
 0x1e0   :  { %s143_s10 = spop %142 }
 0x1e1   :  { %120 = sst [smem:[#allocation7 + $0x3]] %s143_s10 }
 0x1e2   :  { %204 = shalt.err (!%p201_p4)
}
 0x1e3   :  { %s217_s18 = smov [#allocation7]  }
 0x1e4   :  { %128 = dma.smem_to_hbm %s217_s18, 16, %s271_s2, [#allocation4]  }
 0x1e5   :  { %209 = dma.done.wait [#allocation4], 16  }
 0x1e6   :  { %210 = vsyncadd [#allocation4], 4294967280 }
 0x1e7   :  { %132 = sfence }
 0x1e8   :  { %133 = vsyncpa [#allocation3], 1 }
 0x1e9   :  { %134 = vsyncpa [#allocation6], 1 }
 0x1ea   :  { %135 = vsyncpa [#allocation4], 1 }

</bundles_post_ra>
